<compile_context>
chip_gen: v7x
topology: tpu7x:2x2x1
jax: 0.10.0
libtpu: 0.0.40
codegen_flags: <defaults>
</compile_context>

<pallas_src>
import functools

import jax
import jax.numpy as jnp
from jax.experimental import pallas as pl
from jax.experimental.pallas import tpu as pltpu


# --------------------------------------------------------------------------------------
# Fused Conv2d(stride=1, padding=k//2, bias=False) + BatchNorm2d(eval) [+ ReLU] kernel
# --------------------------------------------------------------------------------------
def _conv_bn_kernel(x_ref, w_ref, b_ref, o_ref, *, tap_offsets, tap_len, apply_relu):
    # x_ref: (1, Cin, S)    bf16 — one padded image, flattened spatial (channels-first)
    # w_ref: (T, O, Cin)    bf16 — BN-scale-folded conv weight, one (O, Cin) slab per tap
    # b_ref: (O, 1)         f32  — folded BN bias
    # o_ref: (1, O, Ho*Wp)  f32  — lane-dense output (flattened spatial on lanes)
    acc = None
    for t, off in enumerate(tap_offsets):            # static, fully unrolled (kh*kw taps)
        tap = x_ref[0, :, off:off + tap_len]          # (Cin, L) static slice — in-VMEM im2col
        part = jnp.dot(w_ref[t], tap,                 # (O, Cin) @ (Cin, L) on the MXU
                       preferred_element_type=jnp.float32)
        acc = part if acc is None else acc + part
    y = acc + b_ref[...]                              # folded BN bias (lane broadcast)
    if apply_relu:
        y = jnp.maximum(y, 0.0)
    o_ref[0] = y.astype(o_ref.dtype)


def conv_bn_act(x_nchw, weight_oihw, gamma, beta, running_mean, running_var,
                *, relu, eps=1e-5):
    """Fused Conv2d(stride=1, padding=k//2, bias=False) + BatchNorm2d(eval) [+ ReLU]."""
    N, Cin, H, W = x_nchw.shape
    O, Cin_w, kh, kw = weight_oihw.shape
    assert Cin_w == Cin
    assert kh % 2 == 1 and kw % 2 == 1, "padding=k//2 semantics assume odd kernel sizes"
    ph, pw = kh // 2, kw // 2
    Hp, Wp = H + 2 * ph, W + 2 * pw
    Ho, Wo = H, W                        # stride 1, 'same' padding
    L = Ho * Wp                          # per-tap matmul width (wrap columns sliced later)
    S = Hp * Wp + (kw - 1)               # flattened padded spatial + tail so every tap fits
    T = kh * kw

    # ---- wrapper glue: pad + flatten spatial (stays NCHW; no transposes, no HBM im2col)
    xp = jnp.pad(x_nchw, ((0, 0), (0, 0), (ph, ph), (pw, pw)))
    xflat = jnp.pad(xp.reshape(N, Cin, Hp * Wp), ((0, 0), (0, 0), (0, kw - 1)))
    xflat = xflat.astype(jnp.bfloat16)

    # ---- fold BN (inference) into the conv weight + per-channel bias ----
    scale = gamma / jnp.sqrt(running_var + eps)                          # (O,)
    w_fold = weight_oihw.astype(jnp.float32) * scale[:, None, None, None]
    # (O, Cin, kh, kw) -> (kh, kw, O, Cin) -> (T, O, Cin): one (O, Cin) slab per tap
    w_taps = jnp.transpose(w_fold, (2, 3, 0, 1)).reshape(T, O, Cin).astype(jnp.bfloat16)
    bias = (beta - running_mean * scale).reshape(O, 1).astype(jnp.float32)

    tap_offsets = tuple(dh * Wp + dw for dh in range(kh) for dw in range(kw))
    kernel = functools.partial(_conv_bn_kernel, tap_offsets=tap_offsets,
                               tap_len=L, apply_relu=relu)

    # VMEM budget: double-buffered image + output blocks, resident weights/bias.
    # Cap below v7x's 64 MiB physical VMEM; raise above the small scoped defaults.
    block_bytes = (2 * Cin * S * 2) + (T * O * Cin * 2) + (O * 4) + (2 * O * L * 4)
    vmem_limit = int(min(max(4 * block_bytes, 32 * 1024 * 1024), 48 * 1024 * 1024))

    out_flat = pl.pallas_call(
        kernel,
        out_shape=jax.ShapeDtypeStruct((N, O, L), jnp.float32),
        grid_spec=pltpu.PrefetchScalarGridSpec(
            num_scalar_prefetch=0,
            grid=(N,),                                            # one image per grid step
            in_specs=[
                pl.BlockSpec((1, Cin, S), lambda n: (n, 0, 0)),
                pl.BlockSpec((T, O, Cin), lambda n: (0, 0, 0)),   # weights stay resident
                pl.BlockSpec((O, 1), lambda n: (0, 0)),           # bias stays resident
            ],
            out_specs=pl.BlockSpec((1, O, L), lambda n: (n, 0, 0)),
        ),
        compiler_params=pltpu.CompilerParams(
            dimension_semantics=("parallel",),                    # batch axis -> megacore / 2 TCs
            vmem_limit_bytes=vmem_limit,
        ),
        cost_estimate=pl.CostEstimate(
            flops=2 * N * T * O * Cin * L,
            transcendentals=0,
            bytes_accessed=xflat.size * 2 + w_taps.size * 2 + bias.size * 4 + N * O * L * 4,
        ),
    )(xflat, w_taps, bias)

    # (N, O, Ho*Wp) -> (N, O, Ho, Wp) -> drop the (kw-1) wrap columns -> NCHW output.
    # TODO(synk): for very large spatial sizes, tile output rows with a halo'd manual DMA
    #             instead of one whole image per grid step.
    return out_flat.reshape(N, O, Ho, Wp)[:, :, :, :Wo]


# --------------------------------------------------------------------------------------
# GhostModule / GhostBottleneck wrappers (cheap glue: concat, slice, residual add)
# --------------------------------------------------------------------------------------
def ghost_module(x, w, gamma, beta, mean, var, *, oup, relu):
    # primary conv-bn(-relu) via the fused Pallas kernel; random_projection(x1) is an
    # identity copy, so the module output is cat([x1, x1], dim=1)[:, :oup].
    x1 = conv_bn_act(x, w, gamma, beta, mean, var, relu=relu)
    return jnp.concatenate([x1, x1], axis=1)[:, :oup]


@functools.partial(jax.jit, static_argnames=("mid_chs", "out_chs"))
def ghost_bottleneck(x,
                     g1_w, g1_gamma, g1_beta, g1_mean, g1_var,
                     g2_w, g2_gamma, g2_beta, g2_mean, g2_var,
                     *, mid_chs, out_chs):
    """GhostBottleneck forward with its default config: stride=1, se_ratio=0."""
    in_chs = x.shape[1]
    if in_chs != out_chs:
        # TODO(synk): non-identity shortcut (depthwise conv + BN + 1x1 conv + BN) not implemented.
        raise NotImplementedError("this implementation covers the identity-shortcut config")
    residual = x
    y = ghost_module(x, g1_w, g1_gamma, g1_beta, g1_mean, g1_var, oup=mid_chs, relu=True)
    # TODO(synk): stride>1 (conv_dw + bn_dw) and SqueezeExcite (se_ratio>0) branches are not
    #             exercised by the default GhostBottleneck config and are omitted here.
    y = ghost_module(y, g2_w, g2_gamma, g2_beta, g2_mean, g2_var, oup=out_chs, relu=False)
    return y + residual


# --------------------------------------------------------------------------------------
# Pure-JAX reference (same bf16-weight / f32-accumulation math) for validation
# --------------------------------------------------------------------------------------
def _ref_conv_bn(x, w, gamma, beta, mean, var, *, relu, eps=1e-5):
    scale = gamma / jnp.sqrt(var + eps)
    w_fold = (w.astype(jnp.float32) * scale[:, None, None, None]).astype(jnp.bfloat16)
    ph, pw = w.shape[2] // 2, w.shape[3] // 2
    y = jax.lax.conv_general_dilated(
        x.astype(jnp.bfloat16), w_fold, window_strides=(1, 1),
        padding=[(ph, ph), (pw, pw)],
        dimension_numbers=("NCHW", "OIHW", "NCHW"),
        preferred_element_type=jnp.float32)
    y = y + (beta - mean * scale)[None, :, None, None]
    return jnp.maximum(y, 0.0) if relu else y


def _ref_ghost_module(x, w, gamma, beta, mean, var, *, oup, relu):
    x1 = _ref_conv_bn(x, w, gamma, beta, mean, var, relu=relu)
    return jnp.concatenate([x1, x1], axis=1)[:, :oup]


def _ref_ghost_bottleneck(x, g1, g2, *, mid_chs, out_chs):
    y = _ref_ghost_module(x, *g1, oup=mid_chs, relu=True)
    y = _ref_ghost_module(y, *g2, oup=out_chs, relu=False)
    return y + x


# --------------------------------------------------------------------------------------
if __name__ == "__main__":
    # GhostBottleneck(in_chs=8, mid_chs=16, out_chs=8, stride=1, se_ratio=0.0)
    N, in_chs, H, W = 2, 8, 16, 16
    mid_chs, out_chs = 16, 8
    k = 3
    init1 = -(-mid_chs // 2)      # math.ceil(mid_chs / 2) -> ghost1 primary-conv channels
    init2 = -(-out_chs // 2)      # math.ceil(out_chs / 2) -> ghost2 primary-conv channels

    keys = jax.random.split(jax.random.PRNGKey(0), 11)
    x = jax.random.normal(keys[0], (N, in_chs, H, W), dtype=jnp.float32)

    g1_w = jax.random.normal(keys[1], (init1, in_chs, k, k), dtype=jnp.float32) * 0.1
    g1_gamma = 1.0 + 0.1 * jax.random.normal(keys[2], (init1,), dtype=jnp.float32)
    g1_beta = 0.1 * jax.random.normal(keys[3], (init1,), dtype=jnp.float32)
    g1_mean = 0.1 * jax.random.normal(keys[4], (init1,), dtype=jnp.float32)
    g1_var = jnp.abs(jax.random.normal(keys[5], (init1,), dtype=jnp.float32)) + 0.5

    g2_w = jax.random.normal(keys[6], (init2, mid_chs, k, k), dtype=jnp.float32) * 0.1
    g2_gamma = 1.0 + 0.1 * jax.random.normal(keys[7], (init2,), dtype=jnp.float32)
    g2_beta = 0.1 * jax.random.normal(keys[8], (init2,), dtype=jnp.float32)
    g2_mean = 0.1 * jax.random.normal(keys[9], (init2,), dtype=jnp.float32)
    g2_var = jnp.abs(jax.random.normal(keys[10], (init2,), dtype=jnp.float32)) + 0.5

    out = ghost_bottleneck(x,
                           g1_w, g1_gamma, g1_beta, g1_mean, g1_var,
                           g2_w, g2_gamma, g2_beta, g2_mean, g2_var,
                           mid_chs=mid_chs, out_chs=out_chs)
    out = jax.block_until_ready(out)

    ref = _ref_ghost_bottleneck(
        x,
        (g1_w, g1_gamma, g1_beta, g1_mean, g1_var),
        (g2_w, g2_gamma, g2_beta, g2_mean, g2_var),
        mid_chs=mid_chs, out_chs=out_chs)

    assert out.shape == (N, out_chs, H, W), out.shape
    assert jnp.allclose(out, ref, atol=3e-2, rtol=3e-2), \
        f"mismatch vs reference (max abs diff {jnp.max(jnp.abs(out - ref))})"

    print("KERNEL_OK")
</pallas_src>

<mosaic_0001>
module attributes {stable_mosaic.version = 11 : i64} {
  func.func @_conv_bn_kernel(%arg0: i32, %arg1: memref<1x8x326xbf16, #tpu.memory_space<vmem>>, %arg2: memref<9x8x8xbf16, #tpu.memory_space<vmem>>, %arg3: memref<8x1xf32, #tpu.memory_space<vmem>>, %arg4: memref<1x8x288xf32, #tpu.memory_space<vmem>>) attributes {dimension_semantics = [#tpu.dimension_semantics<parallel>], iteration_bounds = array<i64: 2>, scalar_prefetch = 0 : i64, scratch_operands = 0 : i64, tpu.core_type = #tpu.core_type<tc>, window_params = [{transform_indices = @transform_0, window_bounds = array<i64: 1, 8, 326>}, {pipeline_mode = #tpu.pipeline_mode<synchronous>, transform_indices = @transform_1, window_bounds = array<i64: 9, 8, 8>}, {pipeline_mode = #tpu.pipeline_mode<synchronous>, transform_indices = @transform_2, window_bounds = array<i64: 8, 1>}, {transform_indices = @transform_3, window_bounds = array<i64: 1, 8, 288>}]} {
    %c0 = arith.constant 0 : index
    %c0_0 = arith.constant 0 : index
    %c0_1 = arith.constant 0 : index
    %0 = vector.load %arg1[%c0, %c0_0, %c0_1] : memref<1x8x326xbf16, #tpu.memory_space<vmem>>, vector<1x8x288xbf16>
    %1 = vector.shape_cast %0 : vector<1x8x288xbf16> to vector<8x288xbf16>
    %c0_2 = arith.constant 0 : index
    %c0_3 = arith.constant 0 : index
    %c0_4 = arith.constant 0 : index
    %2 = vector.load %arg2[%c0_2, %c0_3, %c0_4] : memref<9x8x8xbf16, #tpu.memory_space<vmem>>, vector<1x8x8xbf16>
    %3 = vector.shape_cast %2 : vector<1x8x8xbf16> to vector<8x8xbf16>
    %cst = arith.constant dense<0.000000e+00> : vector<8x288xf32>
    %4 = tpu.matmul %3, %1, %cst {dimension_numbers = #tpu.dot_dimension_numbers<[1], [0], [0], [1], [0, 0, 1, 1], [], []>} : vector<8x8xbf16>, vector<8x288xbf16>, vector<8x288xf32> -> vector<8x288xf32>
    %c0_5 = arith.constant 0 : index
    %c0_6 = arith.constant 0 : index
    %c1 = arith.constant 1 : index
    %5 = vector.load %arg1[%c0_5, %c0_6, %c1] : memref<1x8x326xbf16, #tpu.memory_space<vmem>>, vector<1x8x288xbf16>
    %6 = vector.shape_cast %5 : vector<1x8x288xbf16> to vector<8x288xbf16>
    %c1_7 = arith.constant 1 : index
    %c0_8 = arith.constant 0 : index
    %c0_9 = arith.constant 0 : index
    %7 = vector.load %arg2[%c1_7, %c0_8, %c0_9] : memref<9x8x8xbf16, #tpu.memory_space<vmem>>, vector<1x8x8xbf16>
    %8 = vector.shape_cast %7 : vector<1x8x8xbf16> to vector<8x8xbf16>
    %cst_10 = arith.constant dense<0.000000e+00> : vector<8x288xf32>
    %9 = tpu.matmul %8, %6, %cst_10 {dimension_numbers = #tpu.dot_dimension_numbers<[1], [0], [0], [1], [0, 0, 1, 1], [], []>} : vector<8x8xbf16>, vector<8x288xbf16>, vector<8x288xf32> -> vector<8x288xf32>
    %10 = arith.addf %4, %9 : vector<8x288xf32>
    %c0_11 = arith.constant 0 : index
    %c0_12 = arith.constant 0 : index
    %c2 = arith.constant 2 : index
    %11 = vector.load %arg1[%c0_11, %c0_12, %c2] : memref<1x8x326xbf16, #tpu.memory_space<vmem>>, vector<1x8x288xbf16>
    %12 = vector.shape_cast %11 : vector<1x8x288xbf16> to vector<8x288xbf16>
    %c2_13 = arith.constant 2 : index
    %c0_14 = arith.constant 0 : index
    %c0_15 = arith.constant 0 : index
    %13 = vector.load %arg2[%c2_13, %c0_14, %c0_15] : memref<9x8x8xbf16, #tpu.memory_space<vmem>>, vector<1x8x8xbf16>
    %14 = vector.shape_cast %13 : vector<1x8x8xbf16> to vector<8x8xbf16>
    %cst_16 = arith.constant dense<0.000000e+00> : vector<8x288xf32>
    %15 = tpu.matmul %14, %12, %cst_16 {dimension_numbers = #tpu.dot_dimension_numbers<[1], [0], [0], [1], [0, 0, 1, 1], [], []>} : vector<8x8xbf16>, vector<8x288xbf16>, vector<8x288xf32> -> vector<8x288xf32>
    %16 = arith.addf %10, %15 : vector<8x288xf32>
    %c0_17 = arith.constant 0 : index
    %c0_18 = arith.constant 0 : index
    %c18 = arith.constant 18 : index
    %17 = vector.load %arg1[%c0_17, %c0_18, %c18] : memref<1x8x326xbf16, #tpu.memory_space<vmem>>, vector<1x8x288xbf16>
    %18 = vector.shape_cast %17 : vector<1x8x288xbf16> to vector<8x288xbf16>
    %c3 = arith.constant 3 : index
    %c0_19 = arith.constant 0 : index
    %c0_20 = arith.constant 0 : index
    %19 = vector.load %arg2[%c3, %c0_19, %c0_20] : memref<9x8x8xbf16, #tpu.memory_space<vmem>>, vector<1x8x8xbf16>
    %20 = vector.shape_cast %19 : vector<1x8x8xbf16> to vector<8x8xbf16>
    %cst_21 = arith.constant dense<0.000000e+00> : vector<8x288xf32>
    %21 = tpu.matmul %20, %18, %cst_21 {dimension_numbers = #tpu.dot_dimension_numbers<[1], [0], [0], [1], [0, 0, 1, 1], [], []>} : vector<8x8xbf16>, vector<8x288xbf16>, vector<8x288xf32> -> vector<8x288xf32>
    %22 = arith.addf %16, %21 : vector<8x288xf32>
    %c0_22 = arith.constant 0 : index
    %c0_23 = arith.constant 0 : index
    %c19 = arith.constant 19 : index
    %23 = vector.load %arg1[%c0_22, %c0_23, %c19] : memref<1x8x326xbf16, #tpu.memory_space<vmem>>, vector<1x8x288xbf16>
    %24 = vector.shape_cast %23 : vector<1x8x288xbf16> to vector<8x288xbf16>
    %c4 = arith.constant 4 : index
    %c0_24 = arith.constant 0 : index
    %c0_25 = arith.constant 0 : index
    %25 = vector.load %arg2[%c4, %c0_24, %c0_25] : memref<9x8x8xbf16, #tpu.memory_space<vmem>>, vector<1x8x8xbf16>
    %26 = vector.shape_cast %25 : vector<1x8x8xbf16> to vector<8x8xbf16>
    %cst_26 = arith.constant dense<0.000000e+00> : vector<8x288xf32>
    %27 = tpu.matmul %26, %24, %cst_26 {dimension_numbers = #tpu.dot_dimension_numbers<[1], [0], [0], [1], [0, 0, 1, 1], [], []>} : vector<8x8xbf16>, vector<8x288xbf16>, vector<8x288xf32> -> vector<8x288xf32>
    %28 = arith.addf %22, %27 : vector<8x288xf32>
    %c0_27 = arith.constant 0 : index
    %c0_28 = arith.constant 0 : index
    %c20 = arith.constant 20 : index
    %29 = vector.load %arg1[%c0_27, %c0_28, %c20] : memref<1x8x326xbf16, #tpu.memory_space<vmem>>, vector<1x8x288xbf16>
    %30 = vector.shape_cast %29 : vector<1x8x288xbf16> to vector<8x288xbf16>
    %c5 = arith.constant 5 : index
    %c0_29 = arith.constant 0 : index
    %c0_30 = arith.constant 0 : index
    %31 = vector.load %arg2[%c5, %c0_29, %c0_30] : memref<9x8x8xbf16, #tpu.memory_space<vmem>>, vector<1x8x8xbf16>
    %32 = vector.shape_cast %31 : vector<1x8x8xbf16> to vector<8x8xbf16>
    %cst_31 = arith.constant dense<0.000000e+00> : vector<8x288xf32>
    %33 = tpu.matmul %32, %30, %cst_31 {dimension_numbers = #tpu.dot_dimension_numbers<[1], [0], [0], [1], [0, 0, 1, 1], [], []>} : vector<8x8xbf16>, vector<8x288xbf16>, vector<8x288xf32> -> vector<8x288xf32>
    %34 = arith.addf %28, %33 : vector<8x288xf32>
    %c0_32 = arith.constant 0 : index
    %c0_33 = arith.constant 0 : index
    %c36 = arith.constant 36 : index
    %35 = vector.load %arg1[%c0_32, %c0_33, %c36] : memref<1x8x326xbf16, #tpu.memory_space<vmem>>, vector<1x8x288xbf16>
    %36 = vector.shape_cast %35 : vector<1x8x288xbf16> to vector<8x288xbf16>
    %c6 = arith.constant 6 : index
    %c0_34 = arith.constant 0 : index
    %c0_35 = arith.constant 0 : index
    %37 = vector.load %arg2[%c6, %c0_34, %c0_35] : memref<9x8x8xbf16, #tpu.memory_space<vmem>>, vector<1x8x8xbf16>
    %38 = vector.shape_cast %37 : vector<1x8x8xbf16> to vector<8x8xbf16>
    %cst_36 = arith.constant dense<0.000000e+00> : vector<8x288xf32>
    %39 = tpu.matmul %38, %36, %cst_36 {dimension_numbers = #tpu.dot_dimension_numbers<[1], [0], [0], [1], [0, 0, 1, 1], [], []>} : vector<8x8xbf16>, vector<8x288xbf16>, vector<8x288xf32> -> vector<8x288xf32>
    %40 = arith.addf %34, %39 : vector<8x288xf32>
    %c0_37 = arith.constant 0 : index
    %c0_38 = arith.constant 0 : index
    %c37 = arith.constant 37 : index
    %41 = vector.load %arg1[%c0_37, %c0_38, %c37] : memref<1x8x326xbf16, #tpu.memory_space<vmem>>, vector<1x8x288xbf16>
    %42 = vector.shape_cast %41 : vector<1x8x288xbf16> to vector<8x288xbf16>
    %c7 = arith.constant 7 : index
    %c0_39 = arith.constant 0 : index
    %c0_40 = arith.constant 0 : index
    %43 = vector.load %arg2[%c7, %c0_39, %c0_40] : memref<9x8x8xbf16, #tpu.memory_space<vmem>>, vector<1x8x8xbf16>
    %44 = vector.shape_cast %43 : vector<1x8x8xbf16> to vector<8x8xbf16>
    %cst_41 = arith.constant dense<0.000000e+00> : vector<8x288xf32>
    %45 = tpu.matmul %44, %42, %cst_41 {dimension_numbers = #tpu.dot_dimension_numbers<[1], [0], [0], [1], [0, 0, 1, 1], [], []>} : vector<8x8xbf16>, vector<8x288xbf16>, vector<8x288xf32> -> vector<8x288xf32>
    %46 = arith.addf %40, %45 : vector<8x288xf32>
    %c0_42 = arith.constant 0 : index
    %c0_43 = arith.constant 0 : index
    %c38 = arith.constant 38 : index
    %47 = vector.load %arg1[%c0_42, %c0_43, %c38] : memref<1x8x326xbf16, #tpu.memory_space<vmem>>, vector<1x8x288xbf16>
    %48 = vector.shape_cast %47 : vector<1x8x288xbf16> to vector<8x288xbf16>
    %c8 = arith.constant 8 : index
    %c0_44 = arith.constant 0 : index
    %c0_45 = arith.constant 0 : index
    %49 = vector.load %arg2[%c8, %c0_44, %c0_45] : memref<9x8x8xbf16, #tpu.memory_space<vmem>>, vector<1x8x8xbf16>
    %50 = vector.shape_cast %49 : vector<1x8x8xbf16> to vector<8x8xbf16>
    %cst_46 = arith.constant dense<0.000000e+00> : vector<8x288xf32>
    %51 = tpu.matmul %50, %48, %cst_46 {dimension_numbers = #tpu.dot_dimension_numbers<[1], [0], [0], [1], [0, 0, 1, 1], [], []>} : vector<8x8xbf16>, vector<8x288xbf16>, vector<8x288xf32> -> vector<8x288xf32>
    %52 = arith.addf %46, %51 : vector<8x288xf32>
    %c0_47 = arith.constant 0 : index
    %c0_48 = arith.constant 0 : index
    %53 = vector.load %arg3[%c0_47, %c0_48] : memref<8x1xf32, #tpu.memory_space<vmem>>, vector<8x1xf32>
    %54 = vector.broadcast %53 : vector<8x1xf32> to vector<8x288xf32>
    %55 = arith.addf %52, %54 : vector<8x288xf32>
    %cst_49 = arith.constant 0.000000e+00 : f32
    %56 = vector.broadcast %cst_49 : f32 to vector<8x288xf32>
    %57 = arith.maximumf %55, %56 : vector<8x288xf32>
    %c0_50 = arith.constant 0 : index
    %c0_51 = arith.constant 0 : index
    %c0_52 = arith.constant 0 : index
    %58 = vector.load %arg4[%c0_50, %c0_51, %c0_52] : memref<1x8x288xf32, #tpu.memory_space<vmem>>, vector<1x8x288xf32>
    %59 = vector.shape_cast %58 : vector<1x8x288xf32> to vector<8x288xf32>
    %60 = vector.shape_cast %57 : vector<8x288xf32> to vector<1x8x288xf32>
    tpu.vector_store %arg4[%c0_50, %c0_51, %c0_52], %60 {strides = array<i32>} : memref<1x8x288xf32, #tpu.memory_space<vmem>>, vector<1x8x288xf32>,
    return
  }
  func.func @transform_0(%arg0: i32) -> (i32, i32, i32) {
    %c0_i32 = arith.constant 0 : i32
    %c0_i32_0 = arith.constant 0 : i32
    %c0_i32_1 = arith.constant 0 : i32
    return %arg0, %c0_i32, %c0_i32_0 : i32, i32, i32
  }
  func.func @transform_1(%arg0: i32) -> (i32, i32, i32) {
    %c0_i32 = arith.constant 0 : i32
    %c0_i32_0 = arith.constant 0 : i32
    %c0_i32_1 = arith.constant 0 : i32
    %c0_i32_2 = arith.constant 0 : i32
    return %c0_i32, %c0_i32_0, %c0_i32_1 : i32, i32, i32
  }
  func.func @transform_2(%arg0: i32) -> (i32, i32) {
    %c0_i32 = arith.constant 0 : i32
    %c0_i32_0 = arith.constant 0 : i32
    %c0_i32_1 = arith.constant 0 : i32
    return %c0_i32, %c0_i32_0 : i32, i32
  }
  func.func @transform_3(%arg0: i32) -> (i32, i32, i32) {
    %c0_i32 = arith.constant 0 : i32
    %c0_i32_0 = arith.constant 0 : i32
    %c0_i32_1 = arith.constant 0 : i32
    return %arg0, %c0_i32, %c0_i32_0 : i32, i32, i32
  }
}

module attributes {stable_mosaic.version = 11 : i64} {
  func.func @_conv_bn_kernel(%arg0: i32, %arg1: memref<1x16x326xbf16, #tpu.memory_space<vmem>>, %arg2: memref<9x4x16xbf16, #tpu.memory_space<vmem>>, %arg3: memref<4x1xf32, #tpu.memory_space<vmem>>, %arg4: memref<1x4x288xf32, #tpu.memory_space<vmem>>) attributes {dimension_semantics = [#tpu.dimension_semantics<parallel>], iteration_bounds = array<i64: 2>, scalar_prefetch = 0 : i64, scratch_operands = 0 : i64, tpu.core_type = #tpu.core_type<tc>, window_params = [{transform_indices = @transform_0, window_bounds = array<i64: 1, 16, 326>}, {pipeline_mode = #tpu.pipeline_mode<synchronous>, transform_indices = @transform_1, window_bounds = array<i64: 9, 4, 16>}, {pipeline_mode = #tpu.pipeline_mode<synchronous>, transform_indices = @transform_2, window_bounds = array<i64: 4, 1>}, {transform_indices = @transform_3, window_bounds = array<i64: 1, 4, 288>}]} {
    %c0 = arith.constant 0 : index
    %c0_0 = arith.constant 0 : index
    %c0_1 = arith.constant 0 : index
    %0 = vector.load %arg1[%c0, %c0_0, %c0_1] : memref<1x16x326xbf16, #tpu.memory_space<vmem>>, vector<1x16x288xbf16>
    %1 = vector.shape_cast %0 : vector<1x16x288xbf16> to vector<16x288xbf16>
    %c0_2 = arith.constant 0 : index
    %c0_3 = arith.constant 0 : index
    %c0_4 = arith.constant 0 : index
    %2 = vector.load %arg2[%c0_2, %c0_3, %c0_4] : memref<9x4x16xbf16, #tpu.memory_space<vmem>>, vector<1x4x16xbf16>
    %3 = vector.shape_cast %2 : vector<1x4x16xbf16> to vector<4x16xbf16>
    %cst = arith.constant dense<0.000000e+00> : vector<4x288xf32>
    %4 = tpu.matmul %3, %1, %cst {dimension_numbers = #tpu.dot_dimension_numbers<[1], [0], [0], [1], [0, 0, 1, 1], [], []>} : vector<4x16xbf16>, vector<16x288xbf16>, vector<4x288xf32> -> vector<4x288xf32>
    %c0_5 = arith.constant 0 : index
    %c0_6 = arith.constant 0 : index
    %c1 = arith.constant 1 : index
    %5 = vector.load %arg1[%c0_5, %c0_6, %c1] : memref<1x16x326xbf16, #tpu.memory_space<vmem>>, vector<1x16x288xbf16>
    %6 = vector.shape_cast %5 : vector<1x16x288xbf16> to vector<16x288xbf16>
    %c1_7 = arith.constant 1 : index
    %c0_8 = arith.constant 0 : index
    %c0_9 = arith.constant 0 : index
    %7 = vector.load %arg2[%c1_7, %c0_8, %c0_9] : memref<9x4x16xbf16, #tpu.memory_space<vmem>>, vector<1x4x16xbf16>
    %8 = vector.shape_cast %7 : vector<1x4x16xbf16> to vector<4x16xbf16>
    %cst_10 = arith.constant dense<0.000000e+00> : vector<4x288xf32>
    %9 = tpu.matmul %8, %6, %cst_10 {dimension_numbers = #tpu.dot_dimension_numbers<[1], [0], [0], [1], [0, 0, 1, 1], [], []>} : vector<4x16xbf16>, vector<16x288xbf16>, vector<4x288xf32> -> vector<4x288xf32>
    %10 = arith.addf %4, %9 : vector<4x288xf32>
    %c0_11 = arith.constant 0 : index
    %c0_12 = arith.constant 0 : index
    %c2 = arith.constant 2 : index
    %11 = vector.load %arg1[%c0_11, %c0_12, %c2] : memref<1x16x326xbf16, #tpu.memory_space<vmem>>, vector<1x16x288xbf16>
    %12 = vector.shape_cast %11 : vector<1x16x288xbf16> to vector<16x288xbf16>
    %c2_13 = arith.constant 2 : index
    %c0_14 = arith.constant 0 : index
    %c0_15 = arith.constant 0 : index
    %13 = vector.load %arg2[%c2_13, %c0_14, %c0_15] : memref<9x4x16xbf16, #tpu.memory_space<vmem>>, vector<1x4x16xbf16>
    %14 = vector.shape_cast %13 : vector<1x4x16xbf16> to vector<4x16xbf16>
    %cst_16 = arith.constant dense<0.000000e+00> : vector<4x288xf32>
    %15 = tpu.matmul %14, %12, %cst_16 {dimension_numbers = #tpu.dot_dimension_numbers<[1], [0], [0], [1], [0, 0, 1, 1], [], []>} : vector<4x16xbf16>, vector<16x288xbf16>, vector<4x288xf32> -> vector<4x288xf32>
    %16 = arith.addf %10, %15 : vector<4x288xf32>
    %c0_17 = arith.constant 0 : index
    %c0_18 = arith.constant 0 : index
    %c18 = arith.constant 18 : index
    %17 = vector.load %arg1[%c0_17, %c0_18, %c18] : memref<1x16x326xbf16, #tpu.memory_space<vmem>>, vector<1x16x288xbf16>
    %18 = vector.shape_cast %17 : vector<1x16x288xbf16> to vector<16x288xbf16>
    %c3 = arith.constant 3 : index
    %c0_19 = arith.constant 0 : index
    %c0_20 = arith.constant 0 : index
    %19 = vector.load %arg2[%c3, %c0_19, %c0_20] : memref<9x4x16xbf16, #tpu.memory_space<vmem>>, vector<1x4x16xbf16>
    %20 = vector.shape_cast %19 : vector<1x4x16xbf16> to vector<4x16xbf16>
    %cst_21 = arith.constant dense<0.000000e+00> : vector<4x288xf32>
    %21 = tpu.matmul %20, %18, %cst_21 {dimension_numbers = #tpu.dot_dimension_numbers<[1], [0], [0], [1], [0, 0, 1, 1], [], []>} : vector<4x16xbf16>, vector<16x288xbf16>, vector<4x288xf32> -> vector<4x288xf32>
    %22 = arith.addf %16, %21 : vector<4x288xf32>
    %c0_22 = arith.constant 0 : index
    %c0_23 = arith.constant 0 : index
    %c19 = arith.constant 19 : index
    %23 = vector.load %arg1[%c0_22, %c0_23, %c19] : memref<1x16x326xbf16, #tpu.memory_space<vmem>>, vector<1x16x288xbf16>
    %24 = vector.shape_cast %23 : vector<1x16x288xbf16> to vector<16x288xbf16>
    %c4 = arith.constant 4 : index
    %c0_24 = arith.constant 0 : index
    %c0_25 = arith.constant 0 : index
    %25 = vector.load %arg2[%c4, %c0_24, %c0_25] : memref<9x4x16xbf16, #tpu.memory_space<vmem>>, vector<1x4x16xbf16>
    %26 = vector.shape_cast %25 : vector<1x4x16xbf16> to vector<4x16xbf16>
    %cst_26 = arith.constant dense<0.000000e+00> : vector<4x288xf32>
    %27 = tpu.matmul %26, %24, %cst_26 {dimension_numbers = #tpu.dot_dimension_numbers<[1], [0], [0], [1], [0, 0, 1, 1], [], []>} : vector<4x16xbf16>, vector<16x288xbf16>, vector<4x288xf32> -> vector<4x288xf32>
    %28 = arith.addf %22, %27 : vector<4x288xf32>
    %c0_27 = arith.constant 0 : index
    %c0_28 = arith.constant 0 : index
    %c20 = arith.constant 20 : index
    %29 = vector.load %arg1[%c0_27, %c0_28, %c20] : memref<1x16x326xbf16, #tpu.memory_space<vmem>>, vector<1x16x288xbf16>
    %30 = vector.shape_cast %29 : vector<1x16x288xbf16> to vector<16x288xbf16>
    %c5 = arith.constant 5 : index
    %c0_29 = arith.constant 0 : index
    %c0_30 = arith.constant 0 : index
    %31 = vector.load %arg2[%c5, %c0_29, %c0_30] : memref<9x4x16xbf16, #tpu.memory_space<vmem>>, vector<1x4x16xbf16>
    %32 = vector.shape_cast %31 : vector<1x4x16xbf16> to vector<4x16xbf16>
    %cst_31 = arith.constant dense<0.000000e+00> : vector<4x288xf32>
    %33 = tpu.matmul %32, %30, %cst_31 {dimension_numbers = #tpu.dot_dimension_numbers<[1], [0], [0], [1], [0, 0, 1, 1], [], []>} : vector<4x16xbf16>, vector<16x288xbf16>, vector<4x288xf32> -> vector<4x288xf32>
    %34 = arith.addf %28, %33 : vector<4x288xf32>
    %c0_32 = arith.constant 0 : index
    %c0_33 = arith.constant 0 : index
    %c36 = arith.constant 36 : index
    %35 = vector.load %arg1[%c0_32, %c0_33, %c36] : memref<1x16x326xbf16, #tpu.memory_space<vmem>>, vector<1x16x288xbf16>
    %36 = vector.shape_cast %35 : vector<1x16x288xbf16> to vector<16x288xbf16>
    %c6 = arith.constant 6 : index
    %c0_34 = arith.constant 0 : index
    %c0_35 = arith.constant 0 : index
    %37 = vector.load %arg2[%c6, %c0_34, %c0_35] : memref<9x4x16xbf16, #tpu.memory_space<vmem>>, vector<1x4x16xbf16>
    %38 = vector.shape_cast %37 : vector<1x4x16xbf16> to vector<4x16xbf16>
    %cst_36 = arith.constant dense<0.000000e+00> : vector<4x288xf32>
    %39 = tpu.matmul %38, %36, %cst_36 {dimension_numbers = #tpu.dot_dimension_numbers<[1], [0], [0], [1], [0, 0, 1, 1], [], []>} : vector<4x16xbf16>, vector<16x288xbf16>, vector<4x288xf32> -> vector<4x288xf32>
    %40 = arith.addf %34, %39 : vector<4x288xf32>
    %c0_37 = arith.constant 0 : index
    %c0_38 = arith.constant 0 : index
    %c37 = arith.constant 37 : index
    %41 = vector.load %arg1[%c0_37, %c0_38, %c37] : memref<1x16x326xbf16, #tpu.memory_space<vmem>>, vector<1x16x288xbf16>
    %42 = vector.shape_cast %41 : vector<1x16x288xbf16> to vector<16x288xbf16>
    %c7 = arith.constant 7 : index
    %c0_39 = arith.constant 0 : index
    %c0_40 = arith.constant 0 : index
    %43 = vector.load %arg2[%c7, %c0_39, %c0_40] : memref<9x4x16xbf16, #tpu.memory_space<vmem>>, vector<1x4x16xbf16>
    %44 = vector.shape_cast %43 : vector<1x4x16xbf16> to vector<4x16xbf16>
    %cst_41 = arith.constant dense<0.000000e+00> : vector<4x288xf32>
    %45 = tpu.matmul %44, %42, %cst_41 {dimension_numbers = #tpu.dot_dimension_numbers<[1], [0], [0], [1], [0, 0, 1, 1], [], []>} : vector<4x16xbf16>, vector<16x288xbf16>, vector<4x288xf32> -> vector<4x288xf32>
    %46 = arith.addf %40, %45 : vector<4x288xf32>
    %c0_42 = arith.constant 0 : index
    %c0_43 = arith.constant 0 : index
    %c38 = arith.constant 38 : index
    %47 = vector.load %arg1[%c0_42, %c0_43, %c38] : memref<1x16x326xbf16, #tpu.memory_space<vmem>>, vector<1x16x288xbf16>
    %48 = vector.shape_cast %47 : vector<1x16x288xbf16> to vector<16x288xbf16>
    %c8 = arith.constant 8 : index
    %c0_44 = arith.constant 0 : index
    %c0_45 = arith.constant 0 : index
    %49 = vector.load %arg2[%c8, %c0_44, %c0_45] : memref<9x4x16xbf16, #tpu.memory_space<vmem>>, vector<1x4x16xbf16>
    %50 = vector.shape_cast %49 : vector<1x4x16xbf16> to vector<4x16xbf16>
    %cst_46 = arith.constant dense<0.000000e+00> : vector<4x288xf32>
    %51 = tpu.matmul %50, %48, %cst_46 {dimension_numbers = #tpu.dot_dimension_numbers<[1], [0], [0], [1], [0, 0, 1, 1], [], []>} : vector<4x16xbf16>, vector<16x288xbf16>, vector<4x288xf32> -> vector<4x288xf32>
    %52 = arith.addf %46, %51 : vector<4x288xf32>
    %c0_47 = arith.constant 0 : index
    %c0_48 = arith.constant 0 : index
    %53 = vector.load %arg3[%c0_47, %c0_48] : memref<4x1xf32, #tpu.memory_space<vmem>>, vector<4x1xf32>
    %54 = vector.broadcast %53 : vector<4x1xf32> to vector<4x288xf32>
    %55 = arith.addf %52, %54 : vector<4x288xf32>
    %c0_49 = arith.constant 0 : index
    %c0_50 = arith.constant 0 : index
    %c0_51 = arith.constant 0 : index
    %56 = vector.load %arg4[%c0_49, %c0_50, %c0_51] : memref<1x4x288xf32, #tpu.memory_space<vmem>>, vector<1x4x288xf32>
    %57 = vector.shape_cast %56 : vector<1x4x288xf32> to vector<4x288xf32>
    %58 = vector.shape_cast %55 : vector<4x288xf32> to vector<1x4x288xf32>
    tpu.vector_store %arg4[%c0_49, %c0_50, %c0_51], %58 {strides = array<i32>} : memref<1x4x288xf32, #tpu.memory_space<vmem>>, vector<1x4x288xf32>,
    return
  }
  func.func @transform_0(%arg0: i32) -> (i32, i32, i32) {
    %c0_i32 = arith.constant 0 : i32
    %c0_i32_0 = arith.constant 0 : i32
    %c0_i32_1 = arith.constant 0 : i32
    return %arg0, %c0_i32, %c0_i32_0 : i32, i32, i32
  }
  func.func @transform_1(%arg0: i32) -> (i32, i32, i32) {
    %c0_i32 = arith.constant 0 : i32
    %c0_i32_0 = arith.constant 0 : i32
    %c0_i32_1 = arith.constant 0 : i32
    %c0_i32_2 = arith.constant 0 : i32
    return %c0_i32, %c0_i32_0, %c0_i32_1 : i32, i32, i32
  }
  func.func @transform_2(%arg0: i32) -> (i32, i32) {
    %c0_i32 = arith.constant 0 : i32
    %c0_i32_0 = arith.constant 0 : i32
    %c0_i32_1 = arith.constant 0 : i32
    return %c0_i32, %c0_i32_0 : i32, i32
  }
  func.func @transform_3(%arg0: i32) -> (i32, i32, i32) {
    %c0_i32 = arith.constant 0 : i32
    %c0_i32_0 = arith.constant 0 : i32
    %c0_i32_1 = arith.constant 0 : i32
    return %arg0, %c0_i32, %c0_i32_0 : i32, i32, i32
  }
}

</mosaic_0001>

<bundles_post_ra>
// kernel: ghost_bottleneck.2
= control target key start
LH: loop header
LB: loop body
LE: loop exit
PB: predicated region body
PF: predicated region fallthrough
CT: control target
= control target key end

     0   :  { %s1385_s12 = smov 0   ;;  %s1520_s0 = inlined_call_operand.vmem [shape: bf16[2,8,326], index: 0, kind: input, shape index: {}]   ;;  %s1521_s1 = inlined_call_operand.vmem [shape: bf16[9,8,8], index: 1, kind: input, shape index: {}]   ;;  %s1522_s2 = inlined_call_operand.vmem [shape: f32[8,1], index: 2, kind: input, shape index: {}]   ;;  %s1523_s3 = inlined_call_operand.vmem [shape: f32[2,8,288], index: 3, kind: output, shape index: {}]  }
   0x1 LB: > { %s1202_s13 = sadd.s32 4294967295, %s1352_s12   ;;  %p1206_p0 = scmp.ge.s32.totalorder %s1352_s12, 1  ;;  %s1352_s12 = sphi %s1385_s12, %s13_s12  }
   0x2   : > { %p137_p1 = scmp.lt.s32.totalorder %s1352_s12, 3 }
   0x4   : > { %p138_p2 = pnand %p1206_p0, %p137_p1 }
   0x5   : > { %p161_p3 = scmp.lt.s32.totalorder (!%p138_p2), %s1202_s13, 1  ;;  %v1354_v0 = vmov (!%p138_p2), 0.0   ;;  %vm1355_vm0 = vmmov (!%p138_p2), 0   ;;  %v1356_v1 = vmov (!%p138_p2), 0   ;;  %s1357_s18 = smov (!%p138_p2), 127   ;;  %v1131_v6 = vld [vmem:[%s1522_s2] sm:$0xff] (!%p138_p2) }
   0x6   : > { %141 = sbr.rel (%p138_p2) target bundleno = 428 (0x1ac), region = 32  ;;  %1267 = vmatprep.subr.bf16.mxu1 (!%p138_p2), %v1354_v0  ;;  %1269 = vmatprep.mubr.msk.bf16.mxu1 (!%p138_p2), %vm1355_vm0, %v1354_v0  ;;  %s1358_s19 = smov (!%p138_p2), 126   ;;  %vm198_vm1 = vcmask (!%p138_p2), 1043456   ;;  %v1209_v10 = vld [vmem:[%s1521_s1 + $0x4] sm:$0xf] (!%p138_p2)  ;;  %vm194_vm2 = vcmask (!%p138_p2), 64512  }
   0x7   : > { %240 = vmatprep.mubr.bf16.mxu0 (!%p138_p2), %v1356_v1  ;;  %1342 = vset.pattern.permute.xlu0 (!%p138_p2), %v1356_v1  ;;  %s1359_s20 = smov (!%p138_p2), 110   ;;  %s1360_s21 = smov (!%p138_p2), 109   ;;  %vm191_vm3 = vcmask (!%p138_p2), 1039360   ;;  %vm390_vm4 = vcmask (!%p138_p2), 1031168   ;;  %v174_v20 = vld [vmem:[%s1521_s1] sm:$0xf] (!%p138_p2) }
   0x8   : > { %s1361_s22 = smov (!%p138_p2), 108   ;;  %s1362_s23 = smov (!%p138_p2), 92   ;;  %vm497_vm5 = vcmask (!%p138_p2), 900096   ;;  %v1219_v29 = vld [vmem:[%s1521_s1 + $0x8] sm:$0xf] (!%p138_p2)  ;;  %vm604_vm6 = vcmask (!%p138_p2), 891904  }
   0x9   : > { %s1363_s24 = smov (!%p138_p2), 91   ;;  %s1364_s25 = smov (!%p138_p2), 90   ;;  %v1223_v37 = vld [vmem:[%s1521_s1 + $0xc] sm:$0xf] (!%p138_p2)  ;;  %vm711_vm7 = vcmask (!%p138_p2), 883712   ;;  %vm818_vm8 = vcmask (!%p138_p2), 752640  }
   0xa   : > { %v1227_v45 = vld [vmem:[%s1521_s1 + $0x10] sm:$0xf] (!%p138_p2)  ;;  %v1231_v53 = vld [vmem:[%s1521_s1 + $0x14] sm:$0xf] (!%p138_p2)  ;;  %vm925_vm9 = vcmask (!%p138_p2), 744448   ;;  %vm1032_vm10 = vcmask (!%p138_p2), 736256  }
   0xb   : > { %v1235_v61 = vld [vmem:[%s1521_s1 + $0x18] sm:$0xf] (!%p138_p2)  ;;  %vm1145_vm11 = vcmask (!%p138_p2), 261120  }
   0xd   : > { %s1525_s13 = smov (!%p161_p3, %s1202_s13), 1 }
   0xe   : > { %s1321_s14 = smul.u32 12, %s1525_s13 }
  0x10   : > { %s165_s17 = scalar_lea.vmem %s1520_s0, %s1321_s14 }
  0x11   : > { %v1343_v2 = vld [vmem:[%s165_s17 + $0x8] ss:$0 sps:$4 sm:$0xff]   ;;  %v172_v3 = vld [vmem:[%s165_s17] sm:$0xff] }
  0x12   : > { %v1210_v4 = vcombine.low %v172_v3, %v172_v3  ;;  %189 = vrot.lane.b32.xlu1 %v1343_v2, %s1357_s18  ;;  %v1211_v5 = vcombine.high %v172_v3, %v172_v3  ;;  %v299_v11 = vsel %vm198_vm1, %v1343_v2, 0 }
  0x14   : > { %185 = vrot.lane.b32.xlu0 %v1210_v4, %s1357_s18  ;;  %v293_v18 = vsel %vm198_vm1, %v1210_v4, 0 }
  0x16   : > { %384 = vrot.lane.b32.xlu1 %v1210_v4, %s1358_s19 }
  0x18   : > { %187 = vrot.lane.b32.xlu0 %v1211_v5, %s1357_s18 }
  0x1a   : > { %388 = vrot.lane.b32.xlu1 %v1343_v2, %s1358_s19 }
  0x1c   : > { %386 = vrot.lane.b32.xlu0 %v1211_v5, %s1358_s19 }
  0x1e   : > { %493 = vrot.lane.b32.xlu1 %v1211_v5, %s1359_s20 }
  0x20   : > { %491 = vrot.lane.b32.xlu0 %v1210_v4, %s1359_s20 }
  0x22   : > { %598 = vrot.lane.b32.xlu1 %v1210_v4, %s1360_s21 }
  0x24   : > { %495 = vrot.lane.b32.xlu0 %v1343_v2, %s1359_s20 }
  0x26   : > { %602 = vrot.lane.b32.xlu1 %v1343_v2, %s1360_s21 }
  0x28   : > { %600 = vrot.lane.b32.xlu0 %v1211_v5, %s1360_s21  ;;  %s1322_s21 = smul.u32 24, %s1525_s13 }
  0x2a   : > { %707 = vrot.lane.b32.xlu1 %v1211_v5, %s1361_s22 }
  0x2c   : > { %705 = vrot.lane.b32.xlu0 %v1210_v4, %s1361_s22 }
  0x2e   : > { %812 = vrot.lane.b32.xlu1 %v1210_v4, %s1362_s23 }
  0x30   : > { %709 = vrot.lane.b32.xlu0 %v1343_v2, %s1361_s22 }
  0x32   : > { %816 = vrot.lane.b32.xlu1 %v1343_v2, %s1362_s23 }
  0x34   : > { %814 = vrot.lane.b32.xlu0 %v1211_v5, %s1362_s23 }
  0x36   : > { %921 = vrot.lane.b32.xlu1 %v1211_v5, %s1363_s24 }
  0x38   : > { %919 = vrot.lane.b32.xlu0 %v1210_v4, %s1363_s24 }
  0x3a   : > { %1026 = vrot.lane.b32.xlu1 %v1210_v4, %s1364_s25 }
  0x3c   : > { %923 = vrot.lane.b32.xlu0 %v1343_v2, %s1363_s24  ;;  %s170_s24 = scalar_lea.vmem %s1523_s3, %s1322_s21 }
  0x3e   : > { %1030 = vrot.lane.b32.xlu1 %v1343_v2, %s1364_s25 }
  0x40   : > { %1028 = vrot.lane.b32.xlu0 %v1211_v5, %s1364_s25 }
  0x44   : > { %1134 = vperm.xlu0 %1342, %v1131_v6   ;;  %v1239_v6 = vld [vmem:[%s1521_s1 + $0x1c] sm:$0xf] }
  0x84   : > { %v190_v7 = vpop.permute.xlu1 %189 }
  0x85   : > { %v206_v9 = vsel %vm198_vm1, %v190_v7, 0 }
  0x86   : > { %v186_v8 = vpop.permute.xlu0 %185  ;;  %1268 = vmatpush3.bf16.msra.mxu1 %v206_v9 }
  0x87   : > { %1273 = vmatprep.subr.bf16.mxu1 %v1354_v0 }
  0x88   : > { %v385_v12 = vpop.permute.xlu1 %384 }
  0x89   : > { %1270 = vmatmul.mubr.msk.bf16.vlgmr.msra.gmra.mrb[0].mxu1 %vm194_vm2, %v1209_v10 }
  0x8a   : > { %v188_v13 = vpop.permute.xlu0 %187  ;;  %1274 = vmatpush3.bf16.msra.mxu1 %v299_v11  ;;  %1275 = vmatprep.mubr.msk.bf16.mxu1 %vm1355_vm0, %v1354_v0  ;;  %v1243_v11 = vld [vmem:[%s1521_s1 + $0x20] sm:$0xf] }
  0x8b   : > { %v193_v14 = vsel %vm191_vm3, %v188_v13, %v190_v7  ;;  %v192_v15 = vsel %vm191_vm3, %v186_v8, %v188_v13  ;;  %1279 = vmatprep.subr.bf16.mxu1 %v1354_v0 }
  0x8c   : > { %1213 = vmatprep.subr.msk.bf16.mxu0 %vm198_vm1, %v193_v14  ;;  %v200_v16 = vsel %vm198_vm1, %v192_v15, 0  ;;  %v389_v17 = vpop.permute.xlu1 %388 }
  0x8d   : > { %209 = vmatpush1.bf16.msra.mxu0 %v200_v16  ;;  %v403_v22 = vsel %vm198_vm1, %v389_v17, 0 }
  0x8e   : > { %1216 = vmatprep.subr.msk.bf16.mxu0 %vm198_vm1, %v1211_v5  ;;  %v387_v19 = vpop.permute.xlu0 %386 }
  0x8f   : > { %v392_v21 = vsel %vm390_vm4, %v387_v19, %v389_v17  ;;  %v391_v25 = vsel %vm390_vm4, %v385_v12, %v387_v19 }
  0x90   : > { %1214 = vmatmul.mubr.msk.bf16.vlgmr.msra.gmra.mrb[0].mxu0 %vm194_vm2, %v1209_v10  ;;  %v494_v23 = vpop.permute.xlu1 %493  ;;  %v397_v26 = vsel %vm198_vm1, %v391_v25, 0 }
  0x91   : > { %302 = vmatpush1.bf16.msra.mxu0 %v293_v18  ;;  %333 = vmatprep.mubr.bf16.mxu0 %v1356_v1 }
  0x92   : > { %1276 = vmatmul.mubr.msk.bf16.vlgmr.msra.gmra.mrb[4].mxu1 %vm194_vm2, %v174_v20  ;;  %1220 = vmatprep.subr.msk.bf16.mxu0 %vm198_vm1, %v392_v21  ;;  %v492_v24 = vpop.permute.xlu0 %491 }
  0x93   : > { %1280 = vmatpush3.bf16.msra.mxu1 %v403_v22  ;;  %1281 = vmatprep.mubr.msk.bf16.mxu1 %vm1355_vm0, %v1354_v0  ;;  %v498_v33 = vsel %vm497_vm5, %v492_v24, %v494_v23 }
  0x94   : > { %1285 = vmatprep.subr.bf16.mxu1 %v1354_v0  ;;  %v599_v28 = vpop.permute.xlu1 %598  ;;  %v504_v35 = vsel %vm198_vm1, %v498_v33, 0 }
  0x96   : > { %v496_v27 = vpop.permute.xlu0 %495 }
  0x97   : > { %v499_v30 = vsel %vm497_vm5, %v494_v23, %v496_v27  ;;  %v510_v31 = vsel %vm198_vm1, %v496_v27, 0 }
  0x98   : > { %1217 = vmatmul.mubr.msk.bf16.vlgmr.msra.gmra.mrb[4].mxu0 %vm194_vm2, %v174_v20  ;;  %v603_v34 = vpop.permute.xlu1 %602 }
  0x99   : > { %406 = vmatpush1.bf16.msra.mxu0 %v397_v26  ;;  %437 = vmatprep.mubr.bf16.mxu0 %v1356_v1  ;;  %v617_v39 = vsel %vm198_vm1, %v603_v34, 0 }
  0x9a   : > { %1282 = vmatmul.mubr.msk.bf16.vlgmr.msra.gmra.mrb[8].mxu1 %vm194_vm2, %v1219_v29  ;;  %1224 = vmatprep.subr.msk.bf16.mxu0 %vm198_vm1, %v499_v30  ;;  %v601_v32 = vpop.permute.xlu0 %600 }
  0x9b   : > { %1286 = vmatpush3.bf16.msra.mxu1 %v510_v31  ;;  %1287 = vmatprep.mubr.msk.bf16.mxu1 %vm1355_vm0, %v1354_v0  ;;  %v606_v38 = vsel %vm604_vm6, %v601_v32, %v603_v34  ;;  %v605_v41 = vsel %vm604_vm6, %v599_v28, %v601_v32 }
  0x9c   : > { %1291 = vmatprep.subr.bf16.mxu1 %v1354_v0  ;;  %v708_v40 = vpop.permute.xlu1 %707  ;;  %v611_v43 = vsel %vm198_vm1, %v605_v41, 0 }
  0x9e   : > { %v706_v36 = vpop.permute.xlu0 %705 }
  0x9f   : > { %v712_v49 = vsel %vm711_vm7, %v706_v36, %v708_v40 }
  0xa0   : > { %1221 = vmatmul.mubr.msk.bf16.vlgmr.msra.gmra.mrb[8].mxu0 %vm194_vm2, %v1219_v29  ;;  %v813_v44 = vpop.permute.xlu1 %812  ;;  %v718_v51 = vsel %vm198_vm1, %v712_v49, 0 }
  0xa1   : > { %513 = vmatpush1.bf16.msra.mxu0 %v504_v35  ;;  %544 = vmatprep.mubr.bf16.mxu0 %v1356_v1 }
  0xa2   : > { %1288 = vmatmul.mubr.msk.bf16.vlgmr.msra.gmra.mrb[12].mxu1 %vm194_vm2, %v1223_v37  ;;  %1228 = vmatprep.subr.msk.bf16.mxu0 %vm198_vm1, %v606_v38  ;;  %v710_v42 = vpop.permute.xlu0 %709 }
  0xa3   : > { %1292 = vmatpush3.bf16.msra.mxu1 %v617_v39  ;;  %1293 = vmatprep.mubr.msk.bf16.mxu1 %vm1355_vm0, %v1354_v0  ;;  %v713_v46 = vsel %vm711_vm7, %v708_v40, %v710_v42  ;;  %v724_v47 = vsel %vm198_vm1, %v710_v42, 0 }
  0xa4   : > { %1297 = vmatprep.subr.bf16.mxu1 %v1354_v0  ;;  %v817_v50 = vpop.permute.xlu1 %816 }
  0xa5   : > { %v831_v55 = vsel %vm198_vm1, %v817_v50, 0 }
  0xa6   : > { %v815_v48 = vpop.permute.xlu0 %814 }
  0xa7   : > { %v820_v54 = vsel %vm818_vm8, %v815_v48, %v817_v50  ;;  %v819_v57 = vsel %vm818_vm8, %v813_v44, %v815_v48 }
  0xa8   : > { %1225 = vmatmul.mubr.msk.bf16.vlgmr.msra.gmra.mrb[12].mxu0 %vm194_vm2, %v1223_v37  ;;  %v922_v56 = vpop.permute.xlu1 %921  ;;  %v825_v59 = vsel %vm198_vm1, %v819_v57, 0 }
  0xa9   : > { %620 = vmatpush1.bf16.msra.mxu0 %v611_v43  ;;  %651 = vmatprep.mubr.bf16.mxu0 %v1356_v1 }
  0xaa   : > { %1294 = vmatmul.mubr.msk.bf16.vlgmr.msra.gmra.mrb[16].mxu1 %vm194_vm2, %v1227_v45  ;;  %1232 = vmatprep.subr.msk.bf16.mxu0 %vm198_vm1, %v713_v46  ;;  %v920_v52 = vpop.permute.xlu0 %919 }
  0xab   : > { %1298 = vmatpush3.bf16.msra.mxu1 %v724_v47  ;;  %1299 = vmatprep.mubr.msk.bf16.mxu1 %vm1355_vm0, %v1354_v0  ;;  %v926_v2 = vsel %vm925_vm9, %v920_v52, %v922_v56 }
  0xac   : > { %1303 = vmatprep.subr.bf16.mxu1 %v1354_v0  ;;  %v1027_v60 = vpop.permute.xlu1 %1026  ;;  %v932_v5 = vsel %vm198_vm1, %v926_v2, 0 }
  0xae   : > { %v924_v58 = vpop.permute.xlu0 %923 }
  0xaf   : > { %v927_v62 = vsel %vm925_vm9, %v922_v56, %v924_v58  ;;  %v938_v63 = vsel %vm198_vm1, %v924_v58, 0 }
  0xb0   : > { %1229 = vmatmul.mubr.msk.bf16.vlgmr.msra.gmra.mrb[16].mxu0 %vm194_vm2, %v1227_v45  ;;  %v1031_v4 = vpop.permute.xlu1 %1030 }
  0xb1   : > { %727 = vmatpush1.bf16.msra.mxu0 %v718_v51  ;;  %758 = vmatprep.mubr.bf16.mxu0 %v1356_v1  ;;  %v1045_v8 = vsel %vm198_vm1, %v1031_v4, 0 }
  0xb2   : > { %1300 = vmatmul.mubr.msk.bf16.vlgmr.msra.gmra.mrb[20].mxu1 %vm194_vm2, %v1231_v53  ;;  %1236 = vmatprep.subr.msk.bf16.mxu0 %vm198_vm1, %v820_v54  ;;  %v1029_v3 = vpop.permute.xlu0 %1028 }
  0xb3   : > { %1304 = vmatpush3.bf16.msra.mxu1 %v831_v55  ;;  %1305 = vmatprep.mubr.msk.bf16.mxu1 %vm1355_vm0, %v1354_v0  ;;  %v1034_v7 = vsel %vm1032_vm10, %v1029_v3, %v1031_v4  ;;  %v1033_v9 = vsel %vm1032_vm10, %v1027_v60, %v1029_v3 }
  0xb4   : > { %1309 = vmatprep.subr.bf16.mxu1 %v1354_v0  ;;  %v1039_v10 = vsel %vm198_vm1, %v1033_v9, 0 }
  0xb8   : > { %1233 = vmatmul.mubr.msk.bf16.vlgmr.msra.gmra.mrb[20].mxu0 %vm194_vm2, %v1231_v53 }
  0xb9   : > { %834 = vmatpush1.bf16.msra.mxu0 %v825_v59  ;;  %865 = vmatprep.mubr.bf16.mxu0 %v1356_v1 }
  0xba   : > { %1306 = vmatmul.mubr.msk.bf16.vlgmr.msra.gmra.mrb[24].mxu1 %vm194_vm2, %v1235_v61  ;;  %1240 = vmatprep.subr.msk.bf16.mxu0 %vm198_vm1, %v927_v62 }
  0xbb   : > { %1310 = vmatpush3.bf16.msra.mxu1 %v938_v63  ;;  %1311 = vmatprep.mubr.msk.bf16.mxu1 %vm1355_vm0, %v1354_v0 }
  0xbc   : > { %1315 = vmatprep.subr.bf16.mxu1 %v1354_v0 }
  0xc0   : > { %1237 = vmatmul.mubr.msk.bf16.vlgmr.msra.gmra.mrb[24].mxu0 %vm194_vm2, %v1235_v61 }
  0xc1   : > { %941 = vmatpush1.bf16.msra.mxu0 %v932_v5  ;;  %972 = vmatprep.mubr.bf16.mxu0 %v1356_v1 }
  0xc2   : > { %1312 = vmatmul.mubr.msk.bf16.vlgmr.msra.gmra.mrb[28].mxu1 %vm194_vm2, %v1239_v6  ;;  %1244 = vmatprep.subr.msk.bf16.mxu0 %vm198_vm1, %v1034_v7 }
  0xc3   : > { %1316 = vmatpush3.bf16.msra.mxu1 %v1045_v8  ;;  %1317 = vmatprep.mubr.msk.bf16.mxu1 %vm1355_vm0, %v1354_v0 }
  0xc8   : > { %1241 = vmatmul.mubr.msk.bf16.vlgmr.msra.gmra.mrb[28].mxu0 %vm194_vm2, %v1239_v6 }
  0xc9   : > { %1048 = vmatpush1.bf16.msra.mxu0 %v1039_v10  ;;  %1079 = vmatprep.mubr.bf16.mxu0 %v1356_v1 }
  0xca   : > { %1318 = vmatmul.mubr.msk.bf16.vlgmr.msra.gmra.mrb[32].mxu1 %vm194_vm2, %v1243_v11 }
  0xd0   : > { %1245 = vmatmul.mubr.msk.bf16.vlgmr.msra.gmra.mrb[32].mxu0 %vm194_vm2, %v1243_v11 }
 0x15c   : > { %v283_v12 = vpop.f32.mrb[0].mxu1 }
 0x15d   : > { %v1271_v13 = vpop.f32.mrb[1].mxu1 }
 0x15e   : > { %v286_v14 = vpop.f32.mrb[2].mxu1 }
 0x15f   : > { %v1272_v15 = vpop.f32.mrb[3].mxu1 }
 0x163   : > { %v242_v0 = vpop.f32.mrb[0].mxu0 }
 0x164   : > { %v244_v16 = vpop.f32.mrb[1].mxu0 }
 0x165   : > { %v246_v17 = vpop.f32.mrb[2].mxu0  ;;  %v376_v18 = vpop.f32.mrb[4].mxu1 }
 0x166   : > { %v247_v19 = vpop.f32.mrb[3].mxu0  ;;  %v377_v20 = vadd.f32 %v376_v18, %v283_v12  ;;  %v1277_v21 = vpop.f32.mrb[5].mxu1 }
 0x167   : > { %v379_v22 = vpop.f32.mrb[6].mxu1 }
 0x168   : > { %v1278_v23 = vpop.f32.mrb[7].mxu1 }
 0x16b   : > { %v335_v24 = vpop.f32.mrb[4].mxu0 }
 0x16c   : > { %v336_v25 = vadd.f32 %v335_v24, %v242_v0  ;;  %v337_v1 = vpop.f32.mrb[5].mxu0 }
 0x16d   : > { %v338_v26 = vadd.f32 %v337_v1, %v244_v16  ;;  %v339_v27 = vpop.f32.mrb[6].mxu0  ;;  %v480_v28 = vpop.f32.mrb[8].mxu1 }
 0x16e   : > { %v340_v29 = vpop.f32.mrb[7].mxu0  ;;  %v488_v30 = vadd.f32 %v480_v28, %v377_v20  ;;  %v1283_v31 = vpop.f32.mrb[9].mxu1 }
 0x16f   : > { %v483_v32 = vpop.f32.mrb[10].mxu1  ;;  %v1135_v28 = vpop.permute.xlu0 %1134 }
 0x170   : > { %v1284_v33 = vpop.f32.mrb[11].mxu1 }
 0x173   : > { %v439_v34 = vpop.f32.mrb[8].mxu0 }
 0x174   : > { %v486_v35 = vadd.f32 %v439_v34, %v336_v25  ;;  %v441_v36 = vpop.f32.mrb[9].mxu0 }
 0x175   : > { %v487_v37 = vadd.f32 %v441_v36, %v338_v26  ;;  %v443_v38 = vpop.f32.mrb[10].mxu0  ;;  %v587_v39 = vpop.f32.mrb[12].mxu1 }
 0x176   : > { %v444_v40 = vpop.f32.mrb[11].mxu0  ;;  %v595_v41 = vadd.f32 %v587_v39, %v488_v30  ;;  %v1289_v42 = vpop.f32.mrb[13].mxu1 }
 0x177   : > { %v590_v43 = vpop.f32.mrb[14].mxu1 }
 0x178   : > { %v1290_v44 = vpop.f32.mrb[15].mxu1 }
 0x17b   : > { %v546_v45 = vpop.f32.mrb[12].mxu0 }
 0x17c   : > { %v593_v46 = vadd.f32 %v546_v45, %v486_v35  ;;  %v548_v47 = vpop.f32.mrb[13].mxu0 }
 0x17d   : > { %v594_v48 = vadd.f32 %v548_v47, %v487_v37  ;;  %v550_v49 = vpop.f32.mrb[14].mxu0  ;;  %v694_v50 = vpop.f32.mrb[16].mxu1 }
 0x17e   : > { %v551_v51 = vpop.f32.mrb[15].mxu0  ;;  %v702_v52 = vadd.f32 %v694_v50, %v595_v41  ;;  %v1295_v53 = vpop.f32.mrb[17].mxu1 }
 0x17f   : > { %v697_v54 = vpop.f32.mrb[18].mxu1 }
 0x180   : > { %v1296_v55 = vpop.f32.mrb[19].mxu1 }
 0x183   : > { %v653_v56 = vpop.f32.mrb[16].mxu0 }
 0x184   : > { %v700_v57 = vadd.f32 %v653_v56, %v593_v46  ;;  %v655_v58 = vpop.f32.mrb[17].mxu0 }
 0x185   : > { %v701_v59 = vadd.f32 %v655_v58, %v594_v48  ;;  %v657_v60 = vpop.f32.mrb[18].mxu0  ;;  %v801_v61 = vpop.f32.mrb[20].mxu1 }
 0x186   : > { %v658_v62 = vpop.f32.mrb[19].mxu0  ;;  %v809_v63 = vadd.f32 %v801_v61, %v702_v52  ;;  %v1301_v2 = vpop.f32.mrb[21].mxu1 }
 0x187   : > { %v804_v3 = vpop.f32.mrb[22].mxu1 }
 0x188   : > { %v1302_v4 = vpop.f32.mrb[23].mxu1 }
 0x18b   : > { %v760_v5 = vpop.f32.mrb[20].mxu0 }
 0x18c   : > { %v807_v6 = vadd.f32 %v760_v5, %v700_v57  ;;  %v762_v7 = vpop.f32.mrb[21].mxu0 }
 0x18d   : > { %v808_v8 = vadd.f32 %v762_v7, %v701_v59  ;;  %v764_v9 = vpop.f32.mrb[22].mxu0  ;;  %v908_v10 = vpop.f32.mrb[24].mxu1 }
 0x18e   : > { %v765_v11 = vpop.f32.mrb[23].mxu0  ;;  %v916_v12 = vadd.f32 %v908_v10, %v809_v63  ;;  %v1307_v13 = vpop.f32.mrb[25].mxu1 }
 0x18f   : > { %v911_v14 = vpop.f32.mrb[26].mxu1 }
 0x190   : > { %v1308_v15 = vpop.f32.mrb[27].mxu1 }
 0x193   : > { %v867_v0 = vpop.f32.mrb[24].mxu0 }
 0x194   : > { %v914_v16 = vadd.f32 %v867_v0, %v807_v6  ;;  %v869_v17 = vpop.f32.mrb[25].mxu0 }
 0x195   : > { %v915_v18 = vadd.f32 %v869_v17, %v808_v8  ;;  %v871_v19 = vpop.f32.mrb[26].mxu0  ;;  %v1015_v20 = vpop.f32.mrb[28].mxu1 }
 0x196   : > { %v872_v21 = vpop.f32.mrb[27].mxu0  ;;  %v1023_v22 = vadd.f32 %v1015_v20, %v916_v12  ;;  %v1313_v23 = vpop.f32.mrb[29].mxu1 }
 0x197   : > { %v1018_v24 = vpop.f32.mrb[30].mxu1 }
 0x198   : > { %v1314_v25 = vpop.f32.mrb[31].mxu1 }
 0x19b   : > { %v974_v1 = vpop.f32.mrb[28].mxu0 }
 0x19c   : > { %v1021_v26 = vadd.f32 %v974_v1, %v914_v16  ;;  %v976_v27 = vpop.f32.mrb[29].mxu0 }
 0x19d   : > { %v1022_v29 = vadd.f32 %v976_v27, %v915_v18  ;;  %v978_v30 = vpop.f32.mrb[30].mxu0  ;;  %v1122_v31 = vpop.f32.mrb[32].mxu1 }
 0x19e   : > { %v979_v32 = vpop.f32.mrb[31].mxu0  ;;  %v1130_v33 = vadd.f32 %v1122_v31, %v1023_v22  ;;  %v1319_v34 = vpop.f32.mrb[33].mxu1 }
 0x19f   : > { %v1125_v35 = vpop.f32.mrb[34].mxu1 }
 0x1a0   : > { %v1139_v36 = vadd.f32 %v1135_v28, %v1130_v33  ;;  %v1320_v37 = vpop.f32.mrb[35].mxu1 }
 0x1a2   : > { %v1142_v38 = vmax.f32 %v1139_v36, 0.0 }
 0x1a3   : > { %v1081_v39 = vpop.f32.mrb[32].mxu0 }
 0x1a4   : > { %1146 = vst.msk [vmem:[%s170_s24 + $0x10] sm:$0xff] %vm1145_vm11, %v1142_v38  ;;  %v1128_v40 = vadd.f32 %v1081_v39, %v1021_v26  ;;  %v1083_v41 = vpop.f32.mrb[33].mxu0 }
 0x1a5   : > { %v1129_v42 = vadd.f32 %v1083_v41, %v1022_v29  ;;  %v1085_v43 = vpop.f32.mrb[34].mxu0 }
 0x1a6   : > { %v1137_v44 = vadd.f32 %v1135_v28, %v1128_v40  ;;  %v1086_v45 = vpop.f32.mrb[35].mxu0 }
 0x1a7   : > { %v1138_v46 = vadd.f32 %v1135_v28, %v1129_v42 }
 0x1a8   : > { %v1140_v47 = vmax.f32 %v1137_v44, 0.0 }
 0x1a9   : > { %v1141_v48 = vmax.f32 %v1138_v46, 0.0 }
 0x1aa   : > { %1143 = vst [vmem:[%s170_s24] sm:$0xff] %v1140_v47 }
 0x1ab   : > { %1144 = vst [vmem:[%s170_s24 + $0x8] sm:$0xff] %v1141_v48 }
 0x1ac PF: > { %s13_s12 = sadd.s32 1, %s1352_s12  }
 0x1ad   : > { %p10_p4 = scmp.ge.s32.totalorder %s13_s12, 4  }
 0x1af   :  { %12 = sbr.rel (!%p10_p4) target bundleno = 1 (0x1), region = 70 }

// kernel: ghost_bottleneck.3
= control target key start
LH: loop header
LB: loop body
LE: loop exit
PB: predicated region body
PF: predicated region fallthrough
CT: control target
= control target key end

     0   :  { %s1329_s12 = smov 0   ;;  %s1447_s0 = inlined_call_operand.vmem [shape: bf16[2,16,326], index: 0, kind: input, shape index: {}]   ;;  %s1448_s1 = inlined_call_operand.vmem [shape: bf16[9,4,16], index: 1, kind: input, shape index: {}]   ;;  %s1449_s2 = inlined_call_operand.vmem [shape: f32[4,1], index: 2, kind: input, shape index: {}]   ;;  %s1450_s3 = inlined_call_operand.vmem [shape: f32[2,4,288], index: 3, kind: output, shape index: {}]  }
   0x1 LB: > { %s1154_s13 = sadd.s32 4294967295, %s1296_s12   ;;  %p1158_p0 = scmp.ge.s32.totalorder %s1296_s12, 1  ;;  %s1296_s12 = sphi %s1329_s12, %s13_s12  }
   0x2   : > { %p137_p1 = scmp.lt.s32.totalorder %s1296_s12, 3 }
   0x4   : > { %p138_p2 = pnand %p1158_p0, %p137_p1 }
   0x5   : > { %p161_p3 = scmp.lt.s32.totalorder (!%p138_p2), %s1154_s13, 1  ;;  %v1298_v0 = vmov (!%p138_p2), 0.0   ;;  %vm1299_vm0 = vmmov (!%p138_p2), 0   ;;  %v1300_v1 = vmov (!%p138_p2), 0   ;;  %s1301_s18 = smov (!%p138_p2), 127   ;;  %vm198_vm1 = vcmask (!%p138_p2), 1039360  }
   0x6   : > { %141 = sbr.rel (%p138_p2) target bundleno = 426 (0x1aa), region = 32  ;;  %1210 = vmatprep.subr.bf16.mxu1 (!%p138_p2), %v1298_v0  ;;  %1212 = vmatprep.mubr.msk.bf16.mxu1 (!%p138_p2), %vm1299_vm0, %v1298_v0  ;;  %s1302_s19 = smov (!%p138_p2), 126   ;;  %v1083_v5 = vld [vmem:[%s1449_s2] sm:$0xf] (!%p138_p2)  ;;  %vm204_vm2 = vcmask (!%p138_p2), 130048   ;;  %vm384_vm3 = vcmask (!%p138_p2), 1031168  }
   0x7   : > { %240 = vmatprep.mubr.bf16.mxu0 (!%p138_p2), %v1300_v1  ;;  %1285 = vset.pattern.permute.xlu0 (!%p138_p2), %v1300_v1  ;;  %s1303_s20 = smov (!%p138_p2), 110   ;;  %s1304_s21 = smov (!%p138_p2), 109   ;;  %v1161_v10 = vld [vmem:[%s1448_s1 + $0x2] sm:$0x3] (!%p138_p2)  ;;  %v176_v17 = vld [vmem:[%s1448_s1] sm:$0x3] (!%p138_p2) }
   0x8   : > { %s1305_s22 = smov (!%p138_p2), 108   ;;  %s1306_s23 = smov (!%p138_p2), 92   ;;  %vm485_vm4 = vcmask (!%p138_p2), 900096   ;;  %v1169_v23 = vld [vmem:[%s1448_s1 + $0x4] sm:$0x3] (!%p138_p2)  ;;  %vm586_vm5 = vcmask (!%p138_p2), 891904  }
   0x9   : > { %s1307_s24 = smov (!%p138_p2), 91   ;;  %s1308_s25 = smov (!%p138_p2), 90   ;;  %v1172_v29 = vld [vmem:[%s1448_s1 + $0x6] sm:$0x3] (!%p138_p2)  ;;  %vm687_vm6 = vcmask (!%p138_p2), 883712   ;;  %vm788_vm7 = vcmask (!%p138_p2), 752640  }
   0xa   : > { %v1175_v35 = vld [vmem:[%s1448_s1 + $0x8] sm:$0x3] (!%p138_p2)  ;;  %v1178_v41 = vld [vmem:[%s1448_s1 + $0xa] sm:$0x3] (!%p138_p2)  ;;  %vm889_vm8 = vcmask (!%p138_p2), 744448   ;;  %vm990_vm9 = vcmask (!%p138_p2), 736256  }
   0xb   : > { %v1181_v46 = vld [vmem:[%s1448_s1 + $0xc] sm:$0x3] (!%p138_p2)  ;;  %v1184_v52 = vld [vmem:[%s1448_s1 + $0xe] sm:$0x3] (!%p138_p2)  ;;  %v1187_v54 = vld [vmem:[%s1448_s1 + $0x10] sm:$0x3] (!%p138_p2) }
   0xc   : > { %vm1097_vm10 = vcmask (!%p138_p2), 257024  }
   0xd   : > { %s1452_s13 = smov (!%p161_p3, %s1154_s13), 1 }
   0xe   : > { %s1264_s14 = smul.u32 24, %s1452_s13 }
  0x10   : > { %s165_s17 = scalar_lea.vmem %s1447_s0, %s1264_s14 }
  0x11   : > { %v1286_v2 = vld [vmem:[%s165_s17 + $0x4] ss:$12 sps:$4 sm:$0xff]   ;;  %v1288_v3 = vld [vmem:[%s165_s17] ss:$12 sps:$4 sm:$0xff]   ;;  %v1289_v4 = vld [vmem:[%s165_s17 + $0x8] ss:$12 sps:$4 sm:$0xff]  }
  0x12   : > { %194 = vrot.lane.b32.xlu0 %v1286_v2, %s1301_s18  ;;  %192 = vrot.lane.b32.xlu1 %v1288_v3, %s1301_s18 }
  0x16   : > { %196 = vrot.lane.b32.xlu0 %v1289_v4, %s1301_s18  ;;  %380 = vrot.lane.b32.xlu1 %v1286_v2, %s1302_s19 }
  0x1a   : > { %382 = vrot.lane.b32.xlu0 %v1289_v4, %s1302_s19  ;;  %378 = vrot.lane.b32.xlu1 %v1288_v3, %s1302_s19 }
  0x1e   : > { %481 = vrot.lane.b32.xlu0 %v1286_v2, %s1303_s20  ;;  %483 = vrot.lane.b32.xlu1 %v1289_v4, %s1303_s20 }
  0x22   : > { %479 = vrot.lane.b32.xlu0 %v1288_v3, %s1303_s20  ;;  %582 = vrot.lane.b32.xlu1 %v1286_v2, %s1304_s21 }
  0x26   : > { %584 = vrot.lane.b32.xlu0 %v1289_v4, %s1304_s21  ;;  %580 = vrot.lane.b32.xlu1 %v1288_v3, %s1304_s21  ;;  %s1265_s21 = smul.u32 12, %s1452_s13 }
  0x2a   : > { %683 = vrot.lane.b32.xlu0 %v1286_v2, %s1305_s22  ;;  %685 = vrot.lane.b32.xlu1 %v1289_v4, %s1305_s22 }
  0x2e   : > { %681 = vrot.lane.b32.xlu0 %v1288_v3, %s1305_s22  ;;  %784 = vrot.lane.b32.xlu1 %v1286_v2, %s1306_s23 }
  0x32   : > { %786 = vrot.lane.b32.xlu0 %v1289_v4, %s1306_s23  ;;  %782 = vrot.lane.b32.xlu1 %v1288_v3, %s1306_s23 }
  0x36   : > { %885 = vrot.lane.b32.xlu0 %v1286_v2, %s1307_s24  ;;  %887 = vrot.lane.b32.xlu1 %v1289_v4, %s1307_s24 }
  0x3a   : > { %883 = vrot.lane.b32.xlu0 %v1288_v3, %s1307_s24  ;;  %986 = vrot.lane.b32.xlu1 %v1286_v2, %s1308_s25  ;;  %s170_s24 = scalar_lea.vmem %s1450_s3, %s1265_s21 }
  0x3e   : > { %988 = vrot.lane.b32.xlu0 %v1289_v4, %s1308_s25  ;;  %984 = vrot.lane.b32.xlu1 %v1288_v3, %s1308_s25 }
  0x42   : > { %1086 = vperm.xlu0 %1285, %v1083_v5  }
  0x84   : > { %v195_v6 = vpop.permute.xlu0 %194  ;;  %v193_v7 = vpop.permute.xlu1 %192 }
  0x85   : > { %v199_v12 = vsel %vm198_vm1, %v193_v7, %v195_v6 }
  0x88   : > { %v197_v8 = vpop.permute.xlu0 %196  ;;  %v381_v11 = vpop.permute.xlu1 %380 }
  0x89   : > { %1211 = vmatpush3.bf16.msra.mxu1 %v197_v8  ;;  %v200_v9 = vsel %vm198_vm1, %v195_v6, %v197_v8 }
  0x8a   : > { %208 = vmatprep.subr.bf16.mxu0 %v200_v9  ;;  %1216 = vmatprep.subr.bf16.mxu1 %v1298_v0 }
  0x8b   : > { %209 = vmatpush1.bf16.msra.mxu0 %v199_v12 }
  0x8c   : > { %1213 = vmatmul.mubr.msk.bf16.vlgmr.msra.gmra.mrb[0].mxu1 %vm204_vm2, %v1161_v10  ;;  %295 = vmatprep.subr.bf16.mxu0 %v1286_v2  ;;  %v383_v13 = vpop.permute.xlu0 %382  ;;  %v379_v15 = vpop.permute.xlu1 %378 }
  0x8d   : > { %1217 = vmatpush3.bf16.msra.mxu1 %v1289_v4  ;;  %1218 = vmatprep.mubr.msk.bf16.mxu1 %vm1299_vm0, %v1298_v0  ;;  %v386_v14 = vsel %vm384_vm3, %v381_v11, %v383_v13  ;;  %v385_v19 = vsel %vm384_vm3, %v379_v15, %v381_v11 }
  0x8e   : > { %1165 = vmatmul.mubr.msk.bf16.vlgmr.msra.gmra.mrb[0].mxu0 %vm204_vm2, %v1161_v10  ;;  %1222 = vmatprep.subr.bf16.mxu1 %v1298_v0 }
  0x8f   : > { %296 = vmatpush1.bf16.msra.mxu0 %v1288_v3  ;;  %327 = vmatprep.mubr.bf16.mxu0 %v1300_v1 }
  0x90   : > { %393 = vmatprep.subr.bf16.mxu0 %v386_v14  ;;  %v482_v16 = vpop.permute.xlu0 %481  ;;  %v484_v18 = vpop.permute.xlu1 %483 }
  0x91   : > { %v487_v20 = vsel %vm485_vm4, %v482_v16, %v484_v18 }
  0x94   : > { %1219 = vmatmul.mubr.msk.bf16.vlgmr.msra.gmra.mrb[4].mxu1 %vm204_vm2, %v176_v17  ;;  %v480_v21 = vpop.permute.xlu0 %479  ;;  %v583_v22 = vpop.permute.xlu1 %582 }
  0x95   : > { %1223 = vmatpush3.bf16.msra.mxu1 %v383_v13  ;;  %1224 = vmatprep.mubr.msk.bf16.mxu1 %vm1299_vm0, %v1298_v0  ;;  %v486_v25 = vsel %vm485_vm4, %v480_v21, %v482_v16 }
  0x96   : > { %1167 = vmatmul.mubr.msk.bf16.vlgmr.msra.gmra.mrb[4].mxu0 %vm204_vm2, %v176_v17  ;;  %1228 = vmatprep.subr.bf16.mxu1 %v1298_v0 }
  0x97   : > { %394 = vmatpush1.bf16.msra.mxu0 %v385_v19  ;;  %425 = vmatprep.mubr.bf16.mxu0 %v1300_v1 }
  0x98   : > { %494 = vmatprep.subr.bf16.mxu0 %v487_v20  ;;  %v585_v24 = vpop.permute.xlu0 %584  ;;  %v581_v27 = vpop.permute.xlu1 %580 }
  0x99   : > { %v588_v26 = vsel %vm586_vm5, %v583_v22, %v585_v24  ;;  %v587_v31 = vsel %vm586_vm5, %v581_v27, %v583_v22 }
  0x9c   : > { %1225 = vmatmul.mubr.msk.bf16.vlgmr.msra.gmra.mrb[8].mxu1 %vm204_vm2, %v1169_v23  ;;  %v684_v28 = vpop.permute.xlu0 %683  ;;  %v686_v30 = vpop.permute.xlu1 %685 }
  0x9d   : > { %1229 = vmatpush3.bf16.msra.mxu1 %v484_v18  ;;  %1230 = vmatprep.mubr.msk.bf16.mxu1 %vm1299_vm0, %v1298_v0  ;;  %v689_v32 = vsel %vm687_vm6, %v684_v28, %v686_v30 }
  0x9e   : > { %1170 = vmatmul.mubr.msk.bf16.vlgmr.msra.gmra.mrb[8].mxu0 %vm204_vm2, %v1169_v23  ;;  %1234 = vmatprep.subr.bf16.mxu1 %v1298_v0 }
  0x9f   : > { %495 = vmatpush1.bf16.msra.mxu0 %v486_v25  ;;  %526 = vmatprep.mubr.bf16.mxu0 %v1300_v1 }
  0xa0   : > { %595 = vmatprep.subr.bf16.mxu0 %v588_v26  ;;  %v682_v33 = vpop.permute.xlu0 %681  ;;  %v785_v34 = vpop.permute.xlu1 %784 }
  0xa1   : > { %v688_v37 = vsel %vm687_vm6, %v682_v33, %v684_v28 }
  0xa4   : > { %1231 = vmatmul.mubr.msk.bf16.vlgmr.msra.gmra.mrb[12].mxu1 %vm204_vm2, %v1172_v29  ;;  %v787_v36 = vpop.permute.xlu0 %786  ;;  %v783_v39 = vpop.permute.xlu1 %782 }
  0xa5   : > { %1235 = vmatpush3.bf16.msra.mxu1 %v585_v24  ;;  %1236 = vmatprep.mubr.msk.bf16.mxu1 %vm1299_vm0, %v1298_v0  ;;  %v790_v38 = vsel %vm788_vm7, %v785_v34, %v787_v36  ;;  %v789_v43 = vsel %vm788_vm7, %v783_v39, %v785_v34 }
  0xa6   : > { %1173 = vmatmul.mubr.msk.bf16.vlgmr.msra.gmra.mrb[12].mxu0 %vm204_vm2, %v1172_v29  ;;  %1240 = vmatprep.subr.bf16.mxu1 %v1298_v0 }
  0xa7   : > { %596 = vmatpush1.bf16.msra.mxu0 %v587_v31  ;;  %627 = vmatprep.mubr.bf16.mxu0 %v1300_v1 }
  0xa8   : > { %696 = vmatprep.subr.bf16.mxu0 %v689_v32  ;;  %v886_v40 = vpop.permute.xlu0 %885  ;;  %v888_v42 = vpop.permute.xlu1 %887 }
  0xa9   : > { %v891_v44 = vsel %vm889_vm8, %v886_v40, %v888_v42 }
  0xac   : > { %1237 = vmatmul.mubr.msk.bf16.vlgmr.msra.gmra.mrb[16].mxu1 %vm204_vm2, %v1175_v35  ;;  %v884_v45 = vpop.permute.xlu0 %883  ;;  %v987_v48 = vpop.permute.xlu1 %986 }
  0xad   : > { %1241 = vmatpush3.bf16.msra.mxu1 %v686_v30  ;;  %1242 = vmatprep.mubr.msk.bf16.mxu1 %vm1299_vm0, %v1298_v0  ;;  %v890_v49 = vsel %vm889_vm8, %v884_v45, %v886_v40 }
  0xae   : > { %1176 = vmatmul.mubr.msk.bf16.vlgmr.msra.gmra.mrb[16].mxu0 %vm204_vm2, %v1175_v35  ;;  %1246 = vmatprep.subr.bf16.mxu1 %v1298_v0 }
  0xaf   : > { %697 = vmatpush1.bf16.msra.mxu0 %v688_v37  ;;  %728 = vmatprep.mubr.bf16.mxu0 %v1300_v1 }
  0xb0   : > { %797 = vmatprep.subr.bf16.mxu0 %v790_v38  ;;  %v989_v47 = vpop.permute.xlu0 %988  ;;  %v985_v51 = vpop.permute.xlu1 %984 }
  0xb1   : > { %v992_v50 = vsel %vm990_vm9, %v987_v48, %v989_v47  ;;  %v991_v53 = vsel %vm990_vm9, %v985_v51, %v987_v48 }
  0xb4   : > { %1243 = vmatmul.mubr.msk.bf16.vlgmr.msra.gmra.mrb[20].mxu1 %vm204_vm2, %v1178_v41 }
  0xb5   : > { %1247 = vmatpush3.bf16.msra.mxu1 %v787_v36  ;;  %1248 = vmatprep.mubr.msk.bf16.mxu1 %vm1299_vm0, %v1298_v0 }
  0xb6   : > { %1179 = vmatmul.mubr.msk.bf16.vlgmr.msra.gmra.mrb[20].mxu0 %vm204_vm2, %v1178_v41  ;;  %1252 = vmatprep.subr.bf16.mxu1 %v1298_v0 }
  0xb7   : > { %798 = vmatpush1.bf16.msra.mxu0 %v789_v43  ;;  %829 = vmatprep.mubr.bf16.mxu0 %v1300_v1 }
  0xb8   : > { %898 = vmatprep.subr.bf16.mxu0 %v891_v44 }
  0xbc   : > { %1249 = vmatmul.mubr.msk.bf16.vlgmr.msra.gmra.mrb[24].mxu1 %vm204_vm2, %v1181_v46 }
  0xbd   : > { %1253 = vmatpush3.bf16.msra.mxu1 %v888_v42  ;;  %1254 = vmatprep.mubr.msk.bf16.mxu1 %vm1299_vm0, %v1298_v0 }
  0xbe   : > { %1182 = vmatmul.mubr.msk.bf16.vlgmr.msra.gmra.mrb[24].mxu0 %vm204_vm2, %v1181_v46  ;;  %1258 = vmatprep.subr.bf16.mxu1 %v1298_v0 }
  0xbf   : > { %899 = vmatpush1.bf16.msra.mxu0 %v890_v49  ;;  %930 = vmatprep.mubr.bf16.mxu0 %v1300_v1 }
  0xc0   : > { %999 = vmatprep.subr.bf16.mxu0 %v992_v50 }
  0xc4   : > { %1255 = vmatmul.mubr.msk.bf16.vlgmr.msra.gmra.mrb[28].mxu1 %vm204_vm2, %v1184_v52 }
  0xc5   : > { %1259 = vmatpush3.bf16.msra.mxu1 %v989_v47  ;;  %1260 = vmatprep.mubr.msk.bf16.mxu1 %vm1299_vm0, %v1298_v0 }
  0xc6   : > { %1185 = vmatmul.mubr.msk.bf16.vlgmr.msra.gmra.mrb[28].mxu0 %vm204_vm2, %v1184_v52 }
  0xc7   : > { %1000 = vmatpush1.bf16.msra.mxu0 %v991_v53  ;;  %1031 = vmatprep.mubr.bf16.mxu0 %v1300_v1 }
  0xcc   : > { %1261 = vmatmul.mubr.msk.bf16.vlgmr.msra.gmra.mrb[32].mxu1 %vm204_vm2, %v1187_v54 }
  0xce   : > { %1188 = vmatmul.mubr.msk.bf16.vlgmr.msra.gmra.mrb[32].mxu0 %vm204_vm2, %v1187_v54 }
 0x15f   : > { %v283_v55 = vpop.f32.mrb[0].mxu1 }
 0x160   : > { %v1214_v56 = vpop.f32.mrb[1].mxu1 }
 0x161   : > { %v242_v57 = vpop.f32.mrb[0].mxu0  ;;  %v286_v58 = vpop.f32.mrb[2].mxu1 }
 0x162   : > { %v244_v59 = vpop.f32.mrb[1].mxu0  ;;  %v1215_v60 = vpop.f32.mrb[3].mxu1 }
 0x163   : > { %v246_v61 = vpop.f32.mrb[2].mxu0 }
 0x164   : > { %v247_v62 = vpop.f32.mrb[3].mxu0 }
 0x167   : > { %v370_v63 = vpop.f32.mrb[4].mxu1 }
 0x168   : > { %v371_v0 = vadd.f32 %v370_v63, %v283_v55  ;;  %v1220_v2 = vpop.f32.mrb[5].mxu1 }
 0x169   : > { %v329_v1 = vpop.f32.mrb[4].mxu0  ;;  %v373_v3 = vpop.f32.mrb[6].mxu1 }
 0x16a   : > { %v330_v4 = vadd.f32 %v329_v1, %v242_v57  ;;  %v331_v5 = vpop.f32.mrb[5].mxu0  ;;  %v1221_v6 = vpop.f32.mrb[7].mxu1 }
 0x16b   : > { %v332_v7 = vadd.f32 %v331_v5, %v244_v59  ;;  %v333_v8 = vpop.f32.mrb[6].mxu0 }
 0x16c   : > { %v334_v9 = vpop.f32.mrb[7].mxu0 }
 0x16f   : > { %v468_v10 = vpop.f32.mrb[8].mxu1 }
 0x170   : > { %v476_v11 = vadd.f32 %v468_v10, %v371_v0  ;;  %v1226_v12 = vpop.f32.mrb[9].mxu1 }
 0x171   : > { %v427_v13 = vpop.f32.mrb[8].mxu0  ;;  %v471_v14 = vpop.f32.mrb[10].mxu1 }
 0x172   : > { %v474_v15 = vadd.f32 %v427_v13, %v330_v4  ;;  %v429_v16 = vpop.f32.mrb[9].mxu0  ;;  %v1227_v17 = vpop.f32.mrb[11].mxu1 }
 0x173   : > { %v475_v18 = vadd.f32 %v429_v16, %v332_v7  ;;  %v431_v19 = vpop.f32.mrb[10].mxu0  ;;  %v1087_v13 = vpop.permute.xlu0 %1086 }
 0x174   : > { %v432_v20 = vpop.f32.mrb[11].mxu0 }
 0x177   : > { %v569_v21 = vpop.f32.mrb[12].mxu1 }
 0x178   : > { %v577_v22 = vadd.f32 %v569_v21, %v476_v11  ;;  %v1232_v23 = vpop.f32.mrb[13].mxu1 }
 0x179   : > { %v528_v24 = vpop.f32.mrb[12].mxu0  ;;  %v572_v25 = vpop.f32.mrb[14].mxu1 }
 0x17a   : > { %v575_v26 = vadd.f32 %v528_v24, %v474_v15  ;;  %v530_v27 = vpop.f32.mrb[13].mxu0  ;;  %v1233_v28 = vpop.f32.mrb[15].mxu1 }
 0x17b   : > { %v576_v29 = vadd.f32 %v530_v27, %v475_v18  ;;  %v532_v30 = vpop.f32.mrb[14].mxu0 }
 0x17c   : > { %v533_v31 = vpop.f32.mrb[15].mxu0 }
 0x17f   : > { %v670_v32 = vpop.f32.mrb[16].mxu1 }
 0x180   : > { %v678_v33 = vadd.f32 %v670_v32, %v577_v22  ;;  %v1238_v34 = vpop.f32.mrb[17].mxu1 }
 0x181   : > { %v629_v35 = vpop.f32.mrb[16].mxu0  ;;  %v673_v36 = vpop.f32.mrb[18].mxu1 }
 0x182   : > { %v676_v37 = vadd.f32 %v629_v35, %v575_v26  ;;  %v631_v38 = vpop.f32.mrb[17].mxu0  ;;  %v1239_v39 = vpop.f32.mrb[19].mxu1 }
 0x183   : > { %v677_v40 = vadd.f32 %v631_v38, %v576_v29  ;;  %v633_v41 = vpop.f32.mrb[18].mxu0 }
 0x184   : > { %v634_v42 = vpop.f32.mrb[19].mxu0 }
 0x187   : > { %v771_v43 = vpop.f32.mrb[20].mxu1 }
 0x188   : > { %v779_v44 = vadd.f32 %v771_v43, %v678_v33  ;;  %v1244_v45 = vpop.f32.mrb[21].mxu1 }
 0x189   : > { %v730_v46 = vpop.f32.mrb[20].mxu0  ;;  %v774_v47 = vpop.f32.mrb[22].mxu1 }
 0x18a   : > { %v777_v48 = vadd.f32 %v730_v46, %v676_v37  ;;  %v732_v49 = vpop.f32.mrb[21].mxu0  ;;  %v1245_v50 = vpop.f32.mrb[23].mxu1 }
 0x18b   : > { %v778_v51 = vadd.f32 %v732_v49, %v677_v40  ;;  %v734_v52 = vpop.f32.mrb[22].mxu0 }
 0x18c   : > { %v735_v53 = vpop.f32.mrb[23].mxu0 }
 0x18f   : > { %v872_v54 = vpop.f32.mrb[24].mxu1 }
 0x190   : > { %v880_v55 = vadd.f32 %v872_v54, %v779_v44  ;;  %v1250_v56 = vpop.f32.mrb[25].mxu1 }
 0x191   : > { %v831_v57 = vpop.f32.mrb[24].mxu0  ;;  %v875_v58 = vpop.f32.mrb[26].mxu1 }
 0x192   : > { %v878_v59 = vadd.f32 %v831_v57, %v777_v48  ;;  %v833_v60 = vpop.f32.mrb[25].mxu0  ;;  %v1251_v61 = vpop.f32.mrb[27].mxu1 }
 0x193   : > { %v879_v62 = vadd.f32 %v833_v60, %v778_v51  ;;  %v835_v63 = vpop.f32.mrb[26].mxu0 }
 0x194   : > { %v836_v0 = vpop.f32.mrb[27].mxu0 }
 0x197   : > { %v973_v2 = vpop.f32.mrb[28].mxu1 }
 0x198   : > { %v981_v1 = vadd.f32 %v973_v2, %v880_v55  ;;  %v1256_v3 = vpop.f32.mrb[29].mxu1 }
 0x199   : > { %v932_v4 = vpop.f32.mrb[28].mxu0  ;;  %v976_v5 = vpop.f32.mrb[30].mxu1 }
 0x19a   : > { %v979_v6 = vadd.f32 %v932_v4, %v878_v59  ;;  %v934_v7 = vpop.f32.mrb[29].mxu0  ;;  %v1257_v8 = vpop.f32.mrb[31].mxu1 }
 0x19b   : > { %v980_v9 = vadd.f32 %v934_v7, %v879_v62  ;;  %v936_v10 = vpop.f32.mrb[30].mxu0 }
 0x19c   : > { %v937_v11 = vpop.f32.mrb[31].mxu0 }
 0x19f   : > { %v1074_v12 = vpop.f32.mrb[32].mxu1 }
 0x1a0   : > { %v1082_v14 = vadd.f32 %v1074_v12, %v981_v1  ;;  %v1262_v15 = vpop.f32.mrb[33].mxu1 }
 0x1a1   : > { %v1033_v16 = vpop.f32.mrb[32].mxu0  ;;  %v1077_v17 = vpop.f32.mrb[34].mxu1 }
 0x1a2   : > { %v1091_v18 = vadd.f32 %v1087_v13, %v1082_v14  ;;  %v1080_v19 = vadd.f32 %v1033_v16, %v979_v6  ;;  %v1035_v20 = vpop.f32.mrb[33].mxu0  ;;  %v1263_v21 = vpop.f32.mrb[35].mxu1 }
 0x1a3   : > { %v1081_v22 = vadd.f32 %v1035_v20, %v980_v9  ;;  %v1037_v23 = vpop.f32.mrb[34].mxu0 }
 0x1a4   : > { %1098 = vst.msk [vmem:[%s170_s24 + $0x8] sm:$0xf] %vm1097_vm10, %v1091_v18  ;;  %v1089_v24 = vadd.f32 %v1087_v13, %v1080_v19  ;;  %v1038_v25 = vpop.f32.mrb[35].mxu0 }
 0x1a5   : > { %v1090_v26 = vadd.f32 %v1087_v13, %v1081_v22 }
 0x1a7   : > { %v1094_v27 = vcombine.low %v1089_v24, %v1090_v26 }
 0x1a9   : > { %1096 = vst [vmem:[%s170_s24] sm:$0xff] %v1094_v27 }
 0x1aa PF: > { %s13_s12 = sadd.s32 1, %s1296_s12  }
 0x1ab   : > { %p10_p4 = scmp.ge.s32.totalorder %s13_s12, 4  }
 0x1ad   :  { %12 = sbr.rel (!%p10_p4) target bundleno = 1 (0x1), region = 70 }

</bundles_post_ra>
